<compile_context>
chip_gen: v7x
topology: tpu7x:2x2x1
jax: 0.10.0
libtpu: 0.0.40
codegen_flags: <defaults>
</compile_context>

<pallas_src>
import jax
import jax.numpy as jnp
from jax.experimental import pallas as pl
from jax.experimental.pallas import tpu as pltpu


def _round_up(x, m):
    return (x + m - 1) // m * m


def measure_kernel(x_ref, w1_ref, b1_ref, w2_ref, b2_ref, w3t_ref, b3_ref, o_ref):
    """One batch tile of the MeasureNetwork MLP.

    x_ref   : (TILE_B, D)  packed [s1 | a1 | s2[:, :2] | z]  (bf16 or f32)
    w1_ref  : (D, 256)     (bf16 or f32)    b1_ref : (1, 256) f32
    w2_ref  : (256, 32)    (bf16 or f32)    b2_ref : (1, 32)  f32
    w3t_ref : (1, 32) f32                   b3_ref : (1, 1)   f32 (SMEM scalar)
    o_ref   : (1, TILE_B)  f32  lane-dense output row
    """
    x = x_ref[...]

    # layer 1: MXU matmul with f32 accumulation; bias add + relu in f32 (VPU).
    h1 = jnp.dot(x, w1_ref[...], preferred_element_type=jnp.float32) + b1_ref[...]
    h1 = jnp.maximum(h1, 0.0)

    # layer 2: MXU matmul with f32 accumulation.
    h2 = jnp.dot(h1.astype(w2_ref.dtype), w2_ref[...],
                 preferred_element_type=jnp.float32) + b2_ref[...]
    h2 = jnp.maximum(h2, 0.0)

    # layer 3 (32 -> 1): VPU multiply + lane reduce instead of a 32x1 MXU pass,
    # written as a lane-dense (1, TILE_B) row (no masked 1-lane stores).
    h3 = jnp.sum(h2 * w3t_ref[...], axis=-1) + b3_ref[0, 0]      # (TILE_B,)
    o_ref[...] = (jax.nn.sigmoid(h3) * 10.0)[None, :]


def measure_network(s1, a1, s2, z, params, *, tile_b=1024, use_bf16=True):
    """Pallas wrapper: pre-pack inputs, tile the batch, keep weights resident."""
    w1, b1, w2, b2, w3, b3 = params
    B = s1.shape[0]

    # featurizer(s2) = s2[:, 0:2]; concat done once here -> one dense (B, D) slab.
    x = jnp.concatenate([s1, a1, s2[:, 0:2], z], axis=1).astype(jnp.float32)
    D = x.shape[1]

    mxu_dt = jnp.bfloat16 if use_bf16 else jnp.float32
    x = x.astype(mxu_dt)
    w1c = w1.astype(mxu_dt)
    w2c = w2.astype(mxu_dt)
    b1c = b1.reshape(1, -1).astype(jnp.float32)
    b2c = b2.reshape(1, -1).astype(jnp.float32)
    w3t = w3.reshape(1, -1).astype(jnp.float32)     # (1, 32) row for the VPU path
    b3c = b3.reshape(1, 1).astype(jnp.float32)      # scalar, lives in SMEM

    # Batch tiling: tile is a multiple of 8 (sublane), TILE_B>=128 is a multiple
    # of 128 so the output row stays lane-aligned when the grid has >1 step.
    tile = min(tile_b, _round_up(B, 8))
    b_pad = _round_up(B, tile)
    if b_pad != B:
        x = jnp.pad(x, ((0, b_pad - B), (0, 0)))
    grid = (b_pad // tile,)

    out = pl.pallas_call(
        measure_kernel,
        out_shape=jax.ShapeDtypeStruct((1, b_pad), jnp.float32),
        grid=grid,
        in_specs=[
            pl.BlockSpec((tile, D), lambda i: (i, 0)),            # activations (pipelined)
            pl.BlockSpec(w1c.shape, lambda i: (0, 0)),            # weights stay VMEM-resident
            pl.BlockSpec(b1c.shape, lambda i: (0, 0)),
            pl.BlockSpec(w2c.shape, lambda i: (0, 0)),
            pl.BlockSpec(b2c.shape, lambda i: (0, 0)),
            pl.BlockSpec(w3t.shape, lambda i: (0, 0)),
            pl.BlockSpec(b3c.shape, lambda i: (0, 0),
                         memory_space=pltpu.MemorySpace.SMEM),    # scalar bias
        ],
        out_specs=pl.BlockSpec((1, tile), lambda i: (0, i)),      # lane-dense row
        compiler_params=pltpu.CompilerParams(
            dimension_semantics=("parallel",),                    # 2 TCs on v7x
            vmem_limit_bytes=32 * 1024 * 1024,
        ),
    )(x, w1c, b1c, w2c, b2c, w3t, b3c)

    # (1, B_pad) -> (B, 1) column, dropping batch padding.
    return out.reshape(b_pad, 1)[:B]


def init_params(key, state_dim, action_dim, z_dim, feature_dim=2):
    """nn.Linear-style init; weights stored as (in_features, out_features)."""
    in_dim = state_dim + action_dim + feature_dim + z_dim
    keys = jax.random.split(key, 6)

    def linear(kw, kb, fan_in, fan_out):
        bound = 1.0 / jnp.sqrt(jnp.asarray(fan_in, jnp.float32))
        w = jax.random.uniform(kw, (fan_in, fan_out), jnp.float32, -bound, bound)
        b = jax.random.uniform(kb, (1, fan_out), jnp.float32, -bound, bound)
        return w, b

    w1, b1 = linear(keys[0], keys[1], in_dim, 256)
    w2, b2 = linear(keys[2], keys[3], 256, 32)
    w3, b3 = linear(keys[4], keys[5], 32, 1)
    return (w1, b1, w2, b2, w3, b3)


def reference(s1, a1, s2, z, params, use_bf16=True):
    """Plain-JAX reference mirroring the kernel's dtype handling."""
    w1, b1, w2, b2, w3, b3 = params
    dt = jnp.bfloat16 if use_bf16 else jnp.float32
    x = jnp.concatenate([s1, a1, s2[:, 0:2], z], axis=1)
    h1 = jnp.maximum(
        jnp.dot(x.astype(dt), w1.astype(dt), preferred_element_type=jnp.float32) + b1, 0.0)
    h2 = jnp.maximum(
        jnp.dot(h1.astype(dt), w2.astype(dt), preferred_element_type=jnp.float32) + b2, 0.0)
    h3 = h2 @ w3 + b3
    return jax.nn.sigmoid(h3) * 10.0


if __name__ == "__main__":
    batch = 8
    state_dim = 11
    action_dim = 3
    z_dim = 4
    feature_dim = 2

    key = jax.random.PRNGKey(0)
    k_s1, k_a1, k_s2, k_z, k_p = jax.random.split(key, 5)
    s1 = jax.random.normal(k_s1, (batch, state_dim), jnp.float32)
    a1 = jax.random.normal(k_a1, (batch, action_dim), jnp.float32)
    s2 = jax.random.normal(k_s2, (batch, state_dim), jnp.float32)
    z = jax.random.normal(k_z, (batch, z_dim), jnp.float32)

    params = init_params(k_p, state_dim, action_dim, z_dim, feature_dim)

    out = measure_network(s1, a1, s2, z, params, use_bf16=True)
    out = jax.block_until_ready(out)
    assert out.shape == (batch, 1), out.shape

    # Tight check against a dtype-matched reference (same bf16 MXU operands).
    ref = reference(s1, a1, s2, z, params, use_bf16=True)
    assert jnp.allclose(out, ref, atol=1e-3, rtol=1e-3), (out, ref)

    # Loose check against pure-f32 PyTorch semantics (bf16 MXU-operand drift only).
    ref32 = reference(s1, a1, s2, z, params, use_bf16=False)
    assert jnp.allclose(out, ref32, atol=2e-1, rtol=2e-1), (out, ref32)

    print("KERNEL_OK")
</pallas_src>

<mosaic_0001>
module attributes {stable_mosaic.version = 11 : i64} {
  func.func @measure_kernel(%arg0: i32, %arg1: memref<8x20xbf16, #tpu.memory_space<vmem>>, %arg2: memref<20x256xbf16, #tpu.memory_space<vmem>>, %arg3: memref<1x256xf32, #tpu.memory_space<vmem>>, %arg4: memref<256x32xbf16, #tpu.memory_space<vmem>>, %arg5: memref<1x32xf32, #tpu.memory_space<vmem>>, %arg6: memref<1x32xf32, #tpu.memory_space<vmem>>, %arg7: memref<1x1xf32, #tpu.memory_space<smem>>, %arg8: memref<1x8xf32, #tpu.memory_space<vmem>>) attributes {dimension_semantics = [#tpu.dimension_semantics<parallel>], iteration_bounds = array<i64: 1>, scalar_prefetch = 0 : i64, scratch_operands = 0 : i64, tpu.core_type = #tpu.core_type<tc>, window_params = [{transform_indices = @transform_0, window_bounds = array<i64: 8, 20>}, {pipeline_mode = #tpu.pipeline_mode<synchronous>, transform_indices = @transform_1, window_bounds = array<i64: 20, 256>}, {pipeline_mode = #tpu.pipeline_mode<synchronous>, transform_indices = @transform_2, window_bounds = array<i64: 1, 256>}, {pipeline_mode = #tpu.pipeline_mode<synchronous>, transform_indices = @transform_3, window_bounds = array<i64: 256, 32>}, {pipeline_mode = #tpu.pipeline_mode<synchronous>, transform_indices = @transform_4, window_bounds = array<i64: 1, 32>}, {pipeline_mode = #tpu.pipeline_mode<synchronous>, transform_indices = @transform_5, window_bounds = array<i64: 1, 32>}, {transform_indices = @transform_6, window_bounds = array<i64: 1, 1>}, {transform_indices = @transform_7, window_bounds = array<i64: 1, 8>}]} {
    %c0 = arith.constant 0 : index
    %c0_0 = arith.constant 0 : index
    %0 = vector.load %arg1[%c0, %c0_0] : memref<8x20xbf16, #tpu.memory_space<vmem>>, vector<8x20xbf16>
    %c0_1 = arith.constant 0 : index
    %c0_2 = arith.constant 0 : index
    %1 = vector.load %arg2[%c0_1, %c0_2] : memref<20x256xbf16, #tpu.memory_space<vmem>>, vector<20x256xbf16>
    %cst = arith.constant dense<0.000000e+00> : vector<8x256xf32>
    %2 = tpu.matmul %0, %1, %cst {dimension_numbers = #tpu.dot_dimension_numbers<[1], [0], [0], [1], [0, 0, 1, 1], [], []>} : vector<8x20xbf16>, vector<20x256xbf16>, vector<8x256xf32> -> vector<8x256xf32>
    %c0_3 = arith.constant 0 : index
    %c0_4 = arith.constant 0 : index
    %3 = vector.load %arg3[%c0_3, %c0_4] : memref<1x256xf32, #tpu.memory_space<vmem>>, vector<1x256xf32>
    %4 = vector.broadcast %3 : vector<1x256xf32> to vector<8x256xf32>
    %5 = arith.addf %2, %4 : vector<8x256xf32>
    %cst_5 = arith.constant 0.000000e+00 : f32
    %6 = vector.broadcast %cst_5 : f32 to vector<8x256xf32>
    %7 = arith.maximumf %5, %6 : vector<8x256xf32>
    %8 = arith.truncf %7 : vector<8x256xf32> to vector<8x256xbf16>
    %c0_6 = arith.constant 0 : index
    %c0_7 = arith.constant 0 : index
    %9 = vector.load %arg4[%c0_6, %c0_7] : memref<256x32xbf16, #tpu.memory_space<vmem>>, vector<256x32xbf16>
    %cst_8 = arith.constant dense<0.000000e+00> : vector<8x32xf32>
    %10 = tpu.matmul %8, %9, %cst_8 {dimension_numbers = #tpu.dot_dimension_numbers<[1], [0], [0], [1], [0, 0, 1, 1], [], []>} : vector<8x256xbf16>, vector<256x32xbf16>, vector<8x32xf32> -> vector<8x32xf32>
    %c0_9 = arith.constant 0 : index
    %c0_10 = arith.constant 0 : index
    %11 = vector.load %arg5[%c0_9, %c0_10] : memref<1x32xf32, #tpu.memory_space<vmem>>, vector<1x32xf32>
    %12 = vector.broadcast %11 : vector<1x32xf32> to vector<8x32xf32>
    %13 = arith.addf %10, %12 : vector<8x32xf32>
    %cst_11 = arith.constant 0.000000e+00 : f32
    %14 = vector.broadcast %cst_11 : f32 to vector<8x32xf32>
    %15 = arith.maximumf %13, %14 : vector<8x32xf32>
    %c0_12 = arith.constant 0 : index
    %c0_13 = arith.constant 0 : index
    %16 = vector.load %arg6[%c0_12, %c0_13] : memref<1x32xf32, #tpu.memory_space<vmem>>, vector<1x32xf32>
    %17 = vector.broadcast %16 : vector<1x32xf32> to vector<8x32xf32>
    %18 = arith.mulf %15, %17 : vector<8x32xf32>
    %cst_14 = arith.constant dense<0.000000e+00> : vector<8xf32>
    %19 = vector.multi_reduction <add>, %18, %cst_14 [1] : vector<8x32xf32> to vector<8xf32>
    %c0_15 = arith.constant 0 : index
    %c0_16 = arith.constant 0 : index
    %20 = memref.load %arg7[%c0_15, %c0_16] : memref<1x1xf32, #tpu.memory_space<smem>>
    %21 = vector.broadcast %20 : f32 to vector<8xf32>
    %22 = arith.addf %19, %21 : vector<8xf32>
    %23 = arith.negf %22 : vector<8xf32>
    %24 = math.exp %23 : vector<8xf32>
    %cst_17 = arith.constant 1.000000e+00 : f32
    %25 = vector.broadcast %cst_17 : f32 to vector<8xf32>
    %26 = arith.addf %25, %24 : vector<8xf32>
    %27 = arith.divf %25, %26 : vector<8xf32>
    %cst_18 = arith.constant 1.000000e+01 : f32
    %28 = vector.broadcast %cst_18 : f32 to vector<8xf32>
    %29 = arith.mulf %27, %28 : vector<8xf32>
    %30 = vector.shape_cast %29 : vector<8xf32> to vector<1x8xf32>
    %c0_19 = arith.constant 0 : index
    %c0_20 = arith.constant 0 : index
    %31 = vector.load %arg8[%c0_19, %c0_20] : memref<1x8xf32, #tpu.memory_space<vmem>>, vector<1x8xf32>
    tpu.vector_store %arg8[%c0_19, %c0_20], %30 {strides = array<i32>} : memref<1x8xf32, #tpu.memory_space<vmem>>, vector<1x8xf32>,
    return
  }
  func.func @transform_0(%arg0: i32) -> (i32, i32) {
    %c0_i32 = arith.constant 0 : i32
    %c0_i32_0 = arith.constant 0 : i32
    return %arg0, %c0_i32 : i32, i32
  }
  func.func @transform_1(%arg0: i32) -> (i32, i32) {
    %c0_i32 = arith.constant 0 : i32
    %c0_i32_0 = arith.constant 0 : i32
    %c0_i32_1 = arith.constant 0 : i32
    return %c0_i32, %c0_i32_0 : i32, i32
  }
  func.func @transform_2(%arg0: i32) -> (i32, i32) {
    %c0_i32 = arith.constant 0 : i32
    %c0_i32_0 = arith.constant 0 : i32
    %c0_i32_1 = arith.constant 0 : i32
    return %c0_i32, %c0_i32_0 : i32, i32
  }
  func.func @transform_3(%arg0: i32) -> (i32, i32) {
    %c0_i32 = arith.constant 0 : i32
    %c0_i32_0 = arith.constant 0 : i32
    %c0_i32_1 = arith.constant 0 : i32
    return %c0_i32, %c0_i32_0 : i32, i32
  }
  func.func @transform_4(%arg0: i32) -> (i32, i32) {
    %c0_i32 = arith.constant 0 : i32
    %c0_i32_0 = arith.constant 0 : i32
    %c0_i32_1 = arith.constant 0 : i32
    return %c0_i32, %c0_i32_0 : i32, i32
  }
  func.func @transform_5(%arg0: i32) -> (i32, i32) {
    %c0_i32 = arith.constant 0 : i32
    %c0_i32_0 = arith.constant 0 : i32
    %c0_i32_1 = arith.constant 0 : i32
    return %c0_i32, %c0_i32_0 : i32, i32
  }
  func.func @transform_6(%arg0: i32) -> (i32, i32) {
    %c0_i32 = arith.constant 0 : i32
    %c0_i32_0 = arith.constant 0 : i32
    %c0_i32_1 = arith.constant 0 : i32
    return %c0_i32, %c0_i32_0 : i32, i32
  }
  func.func @transform_7(%arg0: i32) -> (i32, i32) {
    %c0_i32 = arith.constant 0 : i32
    %c0_i32_0 = arith.constant 0 : i32
    return %c0_i32, %arg0 : i32, i32
  }
}

</mosaic_0001>

<bundles_post_ra>
// kernel: tpu_custom_call.1
= control target key start
LH: loop header
LB: loop body
LE: loop exit
PB: predicated region body
PF: predicated region fallthrough
CT: control target
= control target key end

     0   :  { %vm64_vm0 = vcmask 1041408   ;;  %v436_v3 = vmov 0   ;;  %vm60_vm1 = vcmask 162816   ;;  %s562_s0 = inlined_call_operand.vmem [shape: bf16[8,20], index: 0, kind: input, shape index: {}]   ;;  %s563_s1 = inlined_call_operand.vmem [shape: bf16[20,256], index: 1, kind: input, shape index: {}]   ;;  %s564_s2 = inlined_call_operand.vmem [shape: f32[1,256], index: 2, kind: input, shape index: {}]   ;;  %s565_s3 = inlined_call_operand.vmem [shape: bf16[256,32], index: 3, kind: input, shape index: {}]   ;;  %s566_s4 = inlined_call_operand.vmem [shape: f32[1,32], index: 4, kind: input, shape index: {}]   ;;  %s567_s5 = inlined_call_operand.vmem [shape: f32[1,32], index: 5, kind: input, shape index: {}]   ;;  %s568_s6 = inlined_call_operand.<no memory space> [shape: f32[1,1], index: 6, kind: input, shape index: {}]   ;;  %s569_s7 = inlined_call_operand.hbm [shape: f32[1,8], index: 7, kind: output, shape index: {}]  }
   0x1   :  { %v387_v0 = vld [vmem:[%s563_s1 + $0x4] ss:$8 sps:$4 sm:$0xff]   ;;  %v389_v1 = vld [vmem:[%s563_s1] ss:$8 sps:$4 sm:$0xff]   ;;  %v32_v2 = vld [vmem:[%s563_s1 + $0x10] sm:$0x33]  ;;  %103 = vmatprep.mubr.bf16.mxu0 %v436_v3 }
   0x2   :  { %71 = vmatprep.subr.bf16.mxu0 %v387_v0  ;;  %v341_v4 = vcombine.high %v32_v2, %v32_v2  ;;  %v340_v5 = vcombine.low %v32_v2, %v32_v2  ;;  %v392_v6 = vld [vmem:[%s565_s3 + $0x40] sm:$0xff]   ;;  %v394_v9 = vld [vmem:[%s565_s3 + $0x48] sm:$0xff]   ;;  %v396_v12 = vld [vmem:[%s565_s3 + $0x50] sm:$0xff]  }
   0x3   :  { %72 = vmatpush1.bf16.msra.mxu0 %v389_v1  ;;  %v393_v7 = vld [vmem:[%s565_s3] sm:$0xff]   ;;  %363 = vmatprep.subr.bf16.mxu1 %v392_v6  ;;  %v395_v11 = vld [vmem:[%s565_s3 + $0x8] sm:$0xff]   ;;  %v397_v13 = vld [vmem:[%s565_s3 + $0x10] sm:$0xff]  }
   0x4   :  { %342 = vmatprep.subr.msk.bf16.mxu0 %vm64_vm0, %v341_v4  ;;  %v66_v8 = vsel %vm64_vm0, %v340_v5, 0  ;;  %v29_v10 = vld [vmem:[%s562_s0] sm:$0xf]  ;;  %364 = vmatpush3.bf16.msra.mxu1 %v393_v7  ;;  %v398_v14 = vld [vmem:[%s565_s3 + $0x58] sm:$0xff]  }
   0x5   :  { %365 = vmatprep.subr.bf16.mxu1 %v394_v9  ;;  %v399_v15 = vld [vmem:[%s565_s3 + $0x18] sm:$0xff]   ;;  %v400_v16 = vld [vmem:[%s565_s3 + $0x60] sm:$0xff]  }
   0x6   :  { %v401_v17 = vld [vmem:[%s565_s3 + $0x20] sm:$0xff]  }
   0x7   :  { %74 = vmatpush1.bf16.msra.mxu0 %v66_v8 }
   0x8   :  { %366 = vmatpush3.bf16.msra.mxu1 %v395_v11 }
   0x9   :  { %367 = vmatprep.subr.bf16.mxu1 %v396_v12 }
   0xa   :  { %343 = vmatmul.mubr.msk.bf16.vlgmr.msra.gmra.mrb[0].mxu0 %vm60_vm1, %v29_v10 }
   0xc   :  { %368 = vmatpush3.bf16.msra.mxu1 %v397_v13 }
   0xd   :  { %369 = vmatprep.subr.bf16.mxu1 %v398_v14 }
  0x10   :  { %370 = vmatpush3.bf16.msra.mxu1 %v399_v15 }
  0x11   :  { %13 = vsyncpa [#allocation4], 0  ;;  %371 = vmatprep.subr.bf16.mxu1 %v400_v16  ;;  %v402_v18 = vld [vmem:[%s565_s3 + $0x68] sm:$0xff]   ;;  %v404_v20 = vld [vmem:[%s565_s3 + $0x70] sm:$0xff]   ;;  %v35_v24 = vlaneseq  ;;  %vm300_vm2 = vcmask 261120   ;;  %v305_v52 = vstv %s568_s6  ;;  %vm322_vm3 = vcmask 57344  }
  0x12   :  { %v403_v19 = vld [vmem:[%s565_s3 + $0x28] sm:$0xff]   ;;  %v405_v21 = vld [vmem:[%s565_s3 + $0x30] sm:$0xff]   ;;  %v406_v22 = vld [vmem:[%s565_s3 + $0x78] sm:$0xff]  }
  0x13   :  { %v407_v23 = vld [vmem:[%s565_s3 + $0x38] sm:$0xff]   ;;  %v36_v25 = vshrl.u32 %v35_v24, 7  ;;  %v33_v27 = vld [vmem:[%s564_s2] sm:$0x3]  ;;  %v316_v58 = vand.u32 127, %v35_v24 }
  0x14   :  { %372 = vmatpush3.bf16.msra.mxu1 %v401_v17  ;;  %v344_v42 = vld [vmem:[%s566_s4] ss:$0 sm:$0xff]  ;;  %s437_s4 = smov [#allocation3]  }
  0x15   :  { %373 = vmatprep.subr.bf16.mxu1 %v402_v18  ;;  %v37_v26 = vsub.s32 0, %v36_v25  ;;  %v41_v28 = vsub.s32 1, %v36_v25  ;;  %v361_v48 = vld [vmem:[%s567_s5] ss:$0 sm:$0xff]  ;;  %v319_v59 = vsub.s32 %v316_v58, %v36_v25  ;;  %s330_s5 = sshll.u32 %s437_s4, 4  ;;  %s331_s5 = int_to_ptr.vmem [resolvable:$true] %s330_s5 }
  0x16   :  { %s412_s20 = scalar_lea.vmem %s331_s5, 16  ;;  %s416_s6 = scalar_lea.vmem %s331_s5, 32 }
  0x17   :  { %v38_v29 = vrot.slane %v33_v27, %v37_v26  ;;  %v42_v30 = vrot.slane %v33_v27, %v41_v28  ;;  %p413_p0 = scmp.ne.s32.totalorder %s331_s5, %s412_s20  ;;  %p417_p1 = scmp.lt.s32.totalorder %s331_s5, %s331_s5 }
  0x18   :  { %374 = vmatpush3.bf16.msra.mxu1 %v403_v19  ;;  %p418_p2 = scmp.lt.s32.totalorder %s416_s6, %s412_s20 }
  0x19   :  { %375 = vmatprep.subr.bf16.mxu1 %v404_v20 }
  0x1a   :  { %p419_p3 = por %p418_p2, %p417_p1 }
  0x1c   :  { %376 = vmatpush3.bf16.msra.mxu1 %v405_v21  ;;  %p420_p4 = pnand %p419_p3, %p413_p0 }
  0x1d   :  { %377 = vmatprep.subr.bf16.mxu1 %v406_v22 }
  0x20   :  { %378 = vmatpush3.bf16.msra.mxu1 %v407_v23 }
  0xdd   :  { %v105_v31 = vpop.f32.mrb[0].mxu0 }
  0xde   :  { %v106_v32 = vadd.f32 %v105_v31, %v38_v29  ;;  %v107_v33 = vpop.f32.mrb[1].mxu0 }
  0xdf   :  { %v108_v34 = vadd.f32 %v107_v33, %v42_v30  ;;  %v109_v35 = vpop.f32.mrb[2].mxu0 }
  0xe0   :  { %v112_v36 = vmax.f32 %v106_v32, 0.0  ;;  %v110_v37 = vpop.f32.mrb[3].mxu0 }
  0xe1   :  { %v113_v38 = vmax.f32 %v108_v34, 0.0 }
  0xe2   :  { %v114_v40 = vpack.c.bf16 %v112_v36, %v112_v36 }
  0xe3   :  { %v115_v39 = vpack.c.bf16 %v113_v38, %v113_v38 }
  0xe5   :  { %283 = vmatprep.mubr.bf16.mxu1 %v115_v39 }
  0xe6   :  { %284 = vmatmul.mubr.bf16.vlgmr.msra.gmra.mrb[0].mxu1 %v114_v40 }
 0x1b9   :  { %v379_v41 = vpop.f32.mrb[0].mxu1 }
 0x1ba   :  { %v380_v43 = vpop.f32.mrb[1].mxu1 }
 0x1bb   :  { %v381_v44 = vadd.f32 %v380_v43, %v379_v41  ;;  %v382_v45 = vpop.f32.mrb[2].mxu1 }
 0x1bc   :  { %v383_v46 = vpop.f32.mrb[3].mxu1 }
 0x1bd   :  { %v286_v47 = vadd.f32 %v381_v44, %v344_v42 }
 0x1bf   :  { %v291_v49 = vmax.f32 %v286_v47, 0.0 }
 0x1c1   :  { %v299_v50 = vmul.f32 %v361_v48, %v291_v49 }
 0x1c3   :  { %v301_v51 = vsel %vm300_vm2, %v299_v50, 0.0 }
 0x1c4   :  { %302 = vadd.xlane.f32.xlu0 %v301_v51 }
 0x251   :  { %v303_v53 = vpop.xlane.xlu0 %302 }
 0x252   :  { %v306_v54 = vadd.f32 %v305_v52, %v303_v53 }
 0x254   :  { %v362_v55 = vmul.f32 -1.442695, %v306_v54 }
 0x256   :  { %408 = vpow2.f32 %v362_v55 }
 0x260   :  { %v409_v56 = vpop.eup %408 }
 0x261   :  { %v310_v57 = vadd.f32 1.0, %v409_v56 }
 0x263   :  { %410 = vrcp.f32 %v310_v57 }
 0x26d   :  { %v411_v60 = vpop.eup %410 }
 0x26e   :  { %v313_v61 = vmul.f32 10.0, %v411_v60 }
 0x270   :  { %v320_v62 = vrot.slane %v313_v61, %v319_v59 }
 0x272   :  { %323 = vst.msk [vmem:[#allocation3] sm:$0x1] %vm322_vm3, %v320_v62 }
 0x273   :  { %423 = shalt.err (!%p420_p4)
}
 0x274   :  { %s424_s23 = scalar_lea.hbm %s569_s7, 16 }
 0x275   :  { %p425_p5 = scmp.ne.s32.totalorder %s569_s7, %s424_s23  ;;  %p428_p6 = scmp.lt.u32.totalorder %s424_s23, %s569_s7 }
 0x277   :  { %p430_p7 = pnand %p428_p6, %p425_p5 }
 0x279   :  { %433 = shalt.err (!%p430_p7)
}
 0x27a   :  { %333 = dma.vmem_to_hbm [thread:$0]  %s331_s5, 16, %s569_s7, [#allocation4]  }
 0x27b   :  { %434 = dma.done.wait [#allocation4], 16  }
 0x27c   :  { %435 = vsyncadd [#allocation4], 4294967280 }
 0x27d   :  { %337 = vsyncpa [#allocation4], 1 }

</bundles_post_ra>
